<compile_context>
chip_gen: v7x
topology: tpu7x:2x2x1
jax: 0.10.0
libtpu: 0.0.40
codegen_flags: <defaults>
</compile_context>

<pallas_src>
import jax
import jax.numpy as jnp
from jax import lax
from jax.experimental import pallas as pl
from jax.experimental.pallas import tpu as pltpu

# ---- static config (synthetic, deterministic) -------------------------------
NUM_CLASSES = 3
S_ = 1 + NUM_CLASSES                       # conf + classes
C = S_ + 4                                 # prediction channels = conf + cls + txywh = 8
GT = C + 1                                 # target channels used: conf+cls+txywh+weight = 9
GDIM = 1 + NUM_CLASSES + 4 + 1 + 4         # full fmatch4yolov1 gdim (ltrb kept only for ref)
NT_SUM = C + 3                             # 11 per-cell sum terms (8 main + neg + npos + psum)
NOUT = NT_SUM + 2                          # + p_max, p_min = 13 per-batch partial scalars
T_ROWS = 16                                # scratch sublane rows (NT_SUM padded to 2 vregs)
EPS_FP16 = 0.0009765625                    # torch.finfo(torch.float16).eps


def _sigmoid(x):
    return 1.0 / (1.0 + jnp.exp(-x))


# layout: channel-major — pyolos [B, C, HW], targets [B, C, HW] + weight [B, 1, HW].
# HW (grid cells) maps to the 128-lane axis; channels map to sublanes so all
# elementwise / transcendental work runs on full 8-sublane slabs.
def loss_yolov1_kernel(p_ref, g_ref, w_ref, out_ref, t_ref):
    p = p_ref[...]                                     # [TB, C, HW] float32
    g = g_ref[...]                                     # [TB, C, HW] float32
    wgt = w_ref[...]                                   # [TB, 1, HW] float32
    hw = p.shape[-1]

    # static per-channel (sublane) row masks
    row = lax.broadcasted_iota(jnp.int32, (C, hw), 0)
    is_cls = (row >= 1) & (row < S_)                   # class channels 1..S_-1
    is_box = row >= S_                                 # txty + twth channels
    is_sig = row < S_ + 2                              # channels whose MSE uses sigmoid(pred)

    # ---- slab-dense transcendentals over all 8 channels (3 EUP slab passes) ----
    e = jnp.exp(-jnp.abs(p))
    lg = jnp.log(1.0 + e)
    sig = jnp.where(p >= 0.0, 1.0, e) / (1.0 + e)      # sigmoid(p), stable both signs
    sp = jnp.maximum(p, 0.0) + lg                      # softplus(p)  = -log(1 - sigmoid(p))
    spn = sp - p                                       # softplus(-p) = -log(sigmoid(p))
    # torch-style BCE(sigmoid(p), g) with the per-term logs clamped at -100
    bce = g * jnp.minimum(spn, 100.0) + (1.0 - g) * jnp.minimum(sp, 100.0)

    pred = jnp.where(is_sig, sig, p)                   # conf/cls/txty: sigmoid; twth: raw
    sq = (pred - g) ** 2                               # [TB, C, HW] (cls rows unused, free)

    gconf = g[:, 0:1, :]
    mask_pos = (gconf > 0.0).astype(jnp.float32)
    mask_neg = (gconf == 0.0).astype(jnp.float32)      # exact-0 compare: faithful to torch ref

    vals = jnp.where(is_cls, bce, sq)                  # per-channel per-cell loss value
    wts = mask_pos * jnp.where(is_box, wgt, 1.0)       # per-channel mask / box weight

    # ---- assemble the per-cell terms as sublanes of one scratch slab ----------
    # rows 0..7: conf_pos, cls*3, xy*2, wh*2 (already weighted); 8: conf_neg;
    # 9: mask_pos (nums_pos); 10: sigmoid(conf) (p_mean).  No concatenate relayout.
    sig_conf = sig[:, 0:1, :]
    t_ref[:, 0:C, :] = vals * wts
    t_ref[:, C:C + 1, :] = sq[:, 0:1, :] * mask_neg
    t_ref[:, C + 1:C + 2, :] = mask_pos
    t_ref[:, C + 2:C + 3, :] = sig_conf

    col = jnp.sum(t_ref[:, 0:NT_SUM, :], axis=-1)      # [TB, 11] single lane reduction
    pmax = jnp.max(sig_conf, axis=-1)                  # [TB, 1]
    pmin = jnp.min(sig_conf, axis=-1)                  # [TB, 1]
    # one lane-dense vector store per grid step
    out_ref[0] = jnp.concatenate([col, pmax, pmin], axis=-1)   # [TB, NOUT]


def _pick_tb(batch, hw):
    """Fuse batches per grid step: amortize ~0.35us/step overhead, keep >=2
    parallel steps for v7x's two TensorCores, stay far below VMEM limits."""
    per_b = (2 * (2 * C + 1) + T_ROWS) * hw * 4   # double-buffered inputs + scratch, bytes
    budget = 8 << 20                              # ~8 MiB per step (v7x-safe)
    tb = 1
    for cand in range(1, batch + 1):
        if batch % cand:
            continue
        if batch >= 2 and batch // cand < 2:      # keep both v7x TCs busy
            continue
        if cand * per_b > budget:
            continue
        tb = max(tb, cand)
    return tb


@jax.jit
def loss_yolov1(pyolos_nchw, gyolos_cm):
    """pyolos_nchw: [B, C, H, W] float32 predictions.
    gyolos_cm:   [B, GT, H, W] float32 channel-major matched targets
                 (conf, cls..., txty, twth, weight)."""
    B, Cc, H, W = pyolos_nchw.shape
    HW = H * W
    p_r = pyolos_nchw.reshape(B, Cc, HW)          # free row-major reshape
    g_full = gyolos_cm.reshape(B, GT, HW)
    g8 = g_full[:, :C, :]                         # 8-channel target slab (aligned with p)
    wgt = g_full[:, C:C + 1, :]                   # weight channel passed separately

    TB = _pick_tb(B, HW)
    nb = B // TB

    sums = pl.pallas_call(
        loss_yolov1_kernel,
        out_shape=jax.ShapeDtypeStruct((nb, TB, NOUT), jnp.float32),
        grid=(nb,),
        in_specs=[pl.BlockSpec((TB, Cc, HW), lambda b: (b, 0, 0)),
                  pl.BlockSpec((TB, C, HW), lambda b: (b, 0, 0)),
                  pl.BlockSpec((TB, 1, HW), lambda b: (b, 0, 0))],
        out_specs=pl.BlockSpec((1, TB, NOUT), lambda b: (b, 0, 0)),
        scratch_shapes=[pltpu.VMEM((TB, T_ROWS, HW), jnp.float32)],
        compiler_params=pltpu.CompilerParams(
            dimension_semantics=("parallel",)),
    )(p_r, g8, wgt)
    sums = sums.reshape(B, NOUT)

    # Tiny O(B*13) epilogue: clamp, reciprocal, channel grouping, batch means.
    nums_pos = jnp.maximum(sums[:, C + 1], EPS_FP16)          # [B]
    inv_np = 1.0 / nums_pos
    l_conf_pos = jnp.mean(sums[:, 0] * inv_np) * 5.0
    l_conf_neg = jnp.mean(sums[:, C] * inv_np) * 1.0
    l_cls = jnp.mean(jnp.sum(sums[:, 1:S_], axis=-1) * inv_np)
    l_txty = jnp.mean(jnp.sum(sums[:, S_:S_ + 2], axis=-1) * inv_np)
    l_twth = jnp.mean(jnp.sum(sums[:, S_ + 2:S_ + 4], axis=-1) * inv_np)
    l_total = l_conf_pos + l_conf_neg + l_cls + l_txty + l_twth

    log_dict = {
        "l_total": l_total, "l_conf_pos": l_conf_pos, "l_conf_neg": l_conf_neg,
        "l_cls": l_cls, "l_xy": l_txty, "l_wh": l_twth,
        "p_max": jnp.max(sums[:, NT_SUM]), "p_min": jnp.min(sums[:, NT_SUM + 1]),
        "p_mean": jnp.sum(sums[:, C + 2]) / (B * HW),
    }
    return l_total, log_dict


# ---- pure-JAX reference (mirrors the PyTorch code / shapes) ------------------
def _bce_clamped(p, g):
    # x_bce(p, g, reduction='none'): torch-style BCE with logs clamped at -100
    logp = jnp.maximum(jnp.log(p), -100.0)
    log1mp = jnp.maximum(jnp.log(1.0 - p), -100.0)
    return -(g * logp + (1.0 - g) * log1mp)


def loss_yolov1_ref(pyolos_nchw, gyolos_bhwg):
    B, Cc, H, W = pyolos_nchw.shape
    p = pyolos_nchw.reshape(B, Cc, -1).transpose(0, 2, 1)   # [B, HW, C]
    g = gyolos_bhwg.reshape(B, -1, GDIM)                    # [B, HW, GDIM]
    gconf = g[:, :, 0]
    mask_pos = (gconf > 0).astype(jnp.float32)
    mask_neg = (gconf == 0).astype(jnp.float32)
    nums_pos = jnp.maximum(mask_pos.sum(-1), EPS_FP16)

    pcls_sig = _sigmoid(p[:, :, 1:S_])
    gcls = g[:, :, 1:S_]
    l_cls = jnp.mean((_bce_clamped(pcls_sig, gcls).sum(-1) * mask_pos).sum(-1) / nums_pos)

    pconf_sig = _sigmoid(p[:, :, 0])
    mse = (pconf_sig - gconf) ** 2
    l_conf_pos = jnp.mean((mse * mask_pos).sum(-1) / nums_pos) * 5.0
    l_conf_neg = jnp.mean((mse * mask_neg).sum(-1) / nums_pos) * 1.0

    ptxty_sig = _sigmoid(p[:, :, S_:S_ + 2])
    ptwth = p[:, :, S_ + 2:S_ + 4]
    weight = g[:, :, S_ + 4]
    gtxty = g[:, :, S_:S_ + 2]
    gtwth = g[:, :, S_ + 2:S_ + 4]
    l_txty = jnp.mean((((ptxty_sig - gtxty) ** 2).sum(-1) * mask_pos * weight).sum(-1) / nums_pos)
    l_twth = jnp.mean((((ptwth - gtwth) ** 2).sum(-1) * mask_pos * weight).sum(-1) / nums_pos)
    return l_conf_pos + l_conf_neg + l_cls + l_txty + l_twth


if __name__ == "__main__":
    B, H, W = 2, 16, 16
    HW = H * W

    key = jax.random.PRNGKey(0)
    pyolos = jax.random.normal(key, (B, C, H, W), dtype=jnp.float32)

    # Deterministic synthetic matched targets (stand-in for fmatch4yolov1).
    # The stand-in emits the kernel layout directly (channel-major, trimmed to
    # the 9 used channels); the full torch-layout tensor is built only for the
    # pure-JAX reference check.
    gy_cm = jnp.zeros((B, GT, HW), jnp.float32)        # kernel input layout
    gy_full = jnp.zeros((B, HW, GDIM), jnp.float32)    # torch layout for reference
    pos_cells = [[3, 40, 177], [10, 55, 220]]
    for b in range(B):
        for j, cell in enumerate(pos_cells[b]):
            cls = (b + j) % NUM_CLASSES
            onehot = jnp.zeros((NUM_CLASSES,), jnp.float32).at[cls].set(1.0)
            txty = jnp.array([0.25 + 0.1 * j, 0.7 - 0.1 * j], jnp.float32)
            twth = jnp.array([0.4 * j - 0.3, 0.2 * j + 0.5], jnp.float32)
            wgt = jnp.array([1.5 - 0.1 * j], jnp.float32)
            ltrb = jnp.array([0.1, 0.2, 0.5, 0.6], jnp.float32) + 0.05 * j
            row9 = jnp.concatenate([jnp.ones((1,), jnp.float32), onehot, txty, twth, wgt])
            gy_cm = gy_cm.at[b, :, cell].set(row9)
            gy_full = gy_full.at[b, cell, :].set(jnp.concatenate([row9, ltrb]))
    gyolos_cm = gy_cm.reshape(B, GT, H, W)
    gyolos_full = gy_full.reshape(B, H, W, GDIM)

    l_total, log_dict = loss_yolov1(pyolos, gyolos_cm)
    jax.block_until_ready(l_total)

    l_ref = loss_yolov1_ref(pyolos, gyolos_full)
    assert jnp.allclose(l_total, l_ref, rtol=1e-4, atol=1e-5), (l_total, l_ref)

    print("KERNEL_OK")
</pallas_src>

<mosaic_0001>
module attributes {stable_mosaic.version = 11 : i64} {
  func.func @loss_yolov1_kernel(%arg0: i32, %arg1: memref<1x8x256xf32, #tpu.memory_space<vmem>>, %arg2: memref<1x8x256xf32, #tpu.memory_space<vmem>>, %arg3: memref<1x1x256xf32, #tpu.memory_space<vmem>>, %arg4: memref<1x1x13xf32, #tpu.memory_space<vmem>>, %arg5: memref<1x16x256xf32, #tpu.memory_space<vmem>>) attributes {dimension_semantics = [#tpu.dimension_semantics<parallel>], iteration_bounds = array<i64: 2>, scalar_prefetch = 0 : i64, scratch_operands = 1 : i64, tpu.core_type = #tpu.core_type<tc>, window_params = [{transform_indices = @transform_0, window_bounds = array<i64: 1, 8, 256>}, {transform_indices = @transform_1, window_bounds = array<i64: 1, 8, 256>}, {transform_indices = @transform_2, window_bounds = array<i64: 1, 1, 256>}, {transform_indices = @transform_3, window_bounds = array<i64: 1, 1, 13>}]} {
    %c0 = arith.constant 0 : index
    %c0_0 = arith.constant 0 : index
    %c0_1 = arith.constant 0 : index
    %0 = vector.load %arg1[%c0, %c0_0, %c0_1] : memref<1x8x256xf32, #tpu.memory_space<vmem>>, vector<1x8x256xf32>
    %c0_2 = arith.constant 0 : index
    %c0_3 = arith.constant 0 : index
    %c0_4 = arith.constant 0 : index
    %1 = vector.load %arg2[%c0_2, %c0_3, %c0_4] : memref<1x8x256xf32, #tpu.memory_space<vmem>>, vector<1x8x256xf32>
    %c0_5 = arith.constant 0 : index
    %c0_6 = arith.constant 0 : index
    %c0_7 = arith.constant 0 : index
    %2 = vector.load %arg3[%c0_5, %c0_6, %c0_7] : memref<1x1x256xf32, #tpu.memory_space<vmem>>, vector<1x1x256xf32>
    %3 = tpu.iota {dimensions = array<i32: 0>} : vector<8x256xi32>
    %c1_i32 = arith.constant 1 : i32
    %4 = vector.broadcast %c1_i32 : i32 to vector<8x256xi32>
    %5 = arith.cmpi sge, %3, %4 : vector<8x256xi32>
    %c4_i32 = arith.constant 4 : i32
    %6 = vector.broadcast %c4_i32 : i32 to vector<8x256xi32>
    %7 = arith.cmpi slt, %3, %6 : vector<8x256xi32>
    %8 = arith.andi %5, %7 : vector<8x256xi1>
    %c4_i32_8 = arith.constant 4 : i32
    %9 = vector.broadcast %c4_i32_8 : i32 to vector<8x256xi32>
    %10 = arith.cmpi sge, %3, %9 : vector<8x256xi32>
    %c6_i32 = arith.constant 6 : i32
    %11 = vector.broadcast %c6_i32 : i32 to vector<8x256xi32>
    %12 = arith.cmpi slt, %3, %11 : vector<8x256xi32>
    %13 = math.absf %0 : vector<1x8x256xf32>
    %cst = arith.constant 0.000000e+00 : f32
    %14 = vector.broadcast %cst : f32 to vector<1x8x256xf32>
    %15 = arith.subf %14, %13 : vector<1x8x256xf32>
    %16 = math.exp %15 : vector<1x8x256xf32>
    %cst_9 = arith.constant 1.000000e+00 : f32
    %17 = vector.broadcast %cst_9 : f32 to vector<1x8x256xf32>
    %18 = arith.addf %17, %16 : vector<1x8x256xf32>
    %19 = math.log %18 : vector<1x8x256xf32>
    %cst_10 = arith.constant 0.000000e+00 : f32
    %20 = vector.broadcast %cst_10 : f32 to vector<1x8x256xf32>
    %21 = arith.cmpf oge, %0, %20 : vector<1x8x256xf32>
    %cst_11 = arith.constant 1.000000e+00 : f32
    %22 = vector.broadcast %cst_11 : f32 to vector<1x8x256xf32>
    %23 = arith.select %21, %22, %16 : vector<1x8x256xi1>, vector<1x8x256xf32>
    %cst_12 = arith.constant 1.000000e+00 : f32
    %24 = vector.broadcast %cst_12 : f32 to vector<1x8x256xf32>
    %25 = arith.addf %24, %16 : vector<1x8x256xf32>
    %26 = arith.divf %23, %25 : vector<1x8x256xf32>
    %cst_13 = arith.constant 0.000000e+00 : f32
    %27 = vector.broadcast %cst_13 : f32 to vector<1x8x256xf32>
    %28 = arith.maximumf %0, %27 : vector<1x8x256xf32>
    %29 = arith.addf %28, %19 : vector<1x8x256xf32>
    %30 = arith.subf %29, %0 : vector<1x8x256xf32>
    %cst_14 = arith.constant 1.000000e+02 : f32
    %31 = vector.broadcast %cst_14 : f32 to vector<1x8x256xf32>
    %32 = arith.minimumf %30, %31 : vector<1x8x256xf32>
    %33 = arith.mulf %1, %32 : vector<1x8x256xf32>
    %cst_15 = arith.constant 1.000000e+00 : f32
    %34 = vector.broadcast %cst_15 : f32 to vector<1x8x256xf32>
    %35 = arith.subf %34, %1 : vector<1x8x256xf32>
    %cst_16 = arith.constant 1.000000e+02 : f32
    %36 = vector.broadcast %cst_16 : f32 to vector<1x8x256xf32>
    %37 = arith.minimumf %29, %36 : vector<1x8x256xf32>
    %38 = arith.mulf %35, %37 : vector<1x8x256xf32>
    %39 = arith.addf %33, %38 : vector<1x8x256xf32>
    %40 = vector.shape_cast %12 : vector<8x256xi1> to vector<1x8x256xi1>
    %41 = arith.select %40, %26, %0 : vector<1x8x256xi1>, vector<1x8x256xf32>
    %42 = arith.subf %41, %1 : vector<1x8x256xf32>
    %43 = arith.mulf %42, %42 : vector<1x8x256xf32>
    %44 = vector.extract_strided_slice %1 {offsets = [0, 0, 0], sizes = [1, 1, 256], strides = [1, 1, 1]} : vector<1x8x256xf32> to vector<1x1x256xf32>
    %cst_17 = arith.constant 0.000000e+00 : f32
    %45 = vector.broadcast %cst_17 : f32 to vector<1x1x256xf32>
    %46 = arith.cmpf ogt, %44, %45 : vector<1x1x256xf32>
    %47 = arith.extui %46 : vector<1x1x256xi1> to vector<1x1x256xi32>
    %48 = arith.sitofp %47 : vector<1x1x256xi32> to vector<1x1x256xf32>
    %cst_18 = arith.constant 0.000000e+00 : f32
    %49 = vector.broadcast %cst_18 : f32 to vector<1x1x256xf32>
    %50 = arith.cmpf oeq, %44, %49 : vector<1x1x256xf32>
    %51 = arith.extui %50 : vector<1x1x256xi1> to vector<1x1x256xi32>
    %52 = arith.sitofp %51 : vector<1x1x256xi32> to vector<1x1x256xf32>
    %53 = vector.shape_cast %8 : vector<8x256xi1> to vector<1x8x256xi1>
    %54 = arith.select %53, %39, %43 : vector<1x8x256xi1>, vector<1x8x256xf32>
    %cst_19 = arith.constant 1.000000e+00 : f32
    %55 = vector.shape_cast %10 : vector<8x256xi1> to vector<1x8x256xi1>
    %56 = vector.shape_cast %2 : vector<1x1x256xf32> to vector<1x1x256xf32>
    %57 = vector.broadcast %56 : vector<1x1x256xf32> to vector<1x8x256xf32>
    %58 = vector.broadcast %cst_19 : f32 to vector<1x8x256xf32>
    %59 = arith.select %55, %57, %58 : vector<1x8x256xi1>, vector<1x8x256xf32>
    %60 = vector.broadcast %48 : vector<1x1x256xf32> to vector<1x8x256xf32>
    %61 = arith.mulf %60, %59 : vector<1x8x256xf32>
    %62 = vector.extract_strided_slice %26 {offsets = [0, 0, 0], sizes = [1, 1, 256], strides = [1, 1, 1]} : vector<1x8x256xf32> to vector<1x1x256xf32>
    %63 = arith.mulf %54, %61 : vector<1x8x256xf32>
    %c0_20 = arith.constant 0 : index
    %c0_21 = arith.constant 0 : index
    %c0_22 = arith.constant 0 : index
    %64 = vector.load %arg5[%c0_20, %c0_21, %c0_22] : memref<1x16x256xf32, #tpu.memory_space<vmem>>, vector<1x8x256xf32>
    tpu.vector_store %arg5[%c0_20, %c0_21, %c0_22], %63 {strides = array<i32>} : memref<1x16x256xf32, #tpu.memory_space<vmem>>, vector<1x8x256xf32>,
    %65 = vector.extract_strided_slice %43 {offsets = [0, 0, 0], sizes = [1, 1, 256], strides = [1, 1, 1]} : vector<1x8x256xf32> to vector<1x1x256xf32>
    %66 = arith.mulf %65, %52 : vector<1x1x256xf32>
    %c0_23 = arith.constant 0 : index
    %c8 = arith.constant 8 : index
    %c0_24 = arith.constant 0 : index
    %67 = vector.load %arg5[%c0_23, %c8, %c0_24] : memref<1x16x256xf32, #tpu.memory_space<vmem>>, vector<1x1x256xf32>
    tpu.vector_store %arg5[%c0_23, %c8, %c0_24], %66 {strides = array<i32>} : memref<1x16x256xf32, #tpu.memory_space<vmem>>, vector<1x1x256xf32>,
    %c0_25 = arith.constant 0 : index
    %c9 = arith.constant 9 : index
    %c0_26 = arith.constant 0 : index
    %68 = vector.load %arg5[%c0_25, %c9, %c0_26] : memref<1x16x256xf32, #tpu.memory_space<vmem>>, vector<1x1x256xf32>
    tpu.vector_store %arg5[%c0_25, %c9, %c0_26], %48 {strides = array<i32>} : memref<1x16x256xf32, #tpu.memory_space<vmem>>, vector<1x1x256xf32>,
    %c0_27 = arith.constant 0 : index
    %c10 = arith.constant 10 : index
    %c0_28 = arith.constant 0 : index
    %69 = vector.load %arg5[%c0_27, %c10, %c0_28] : memref<1x16x256xf32, #tpu.memory_space<vmem>>, vector<1x1x256xf32>
    tpu.vector_store %arg5[%c0_27, %c10, %c0_28], %62 {strides = array<i32>} : memref<1x16x256xf32, #tpu.memory_space<vmem>>, vector<1x1x256xf32>,
    %c0_29 = arith.constant 0 : index
    %c0_30 = arith.constant 0 : index
    %c0_31 = arith.constant 0 : index
    %70 = vector.load %arg5[%c0_29, %c0_30, %c0_31] : memref<1x16x256xf32, #tpu.memory_space<vmem>>, vector<1x11x256xf32>
    %cst_32 = arith.constant dense<0.000000e+00> : vector<1x11xf32>
    %71 = vector.multi_reduction <add>, %70, %cst_32 [2] : vector<1x11x256xf32> to vector<1x11xf32>
    %cst_33 = arith.constant dense<0xFF800000> : vector<1x1xf32>
    %72 = vector.multi_reduction <maximumf>, %62, %cst_33 [2] : vector<1x1x256xf32> to vector<1x1xf32>
    %cst_34 = arith.constant dense<0x7F800000> : vector<1x1xf32>
    %73 = vector.multi_reduction <minimumf>, %62, %cst_34 [2] : vector<1x1x256xf32> to vector<1x1xf32>
    %74 = tpu.concatenate %71, %72, %73 in 1 : vector<1x11xf32>, vector<1x1xf32>, vector<1x1xf32> -> vector<1x13xf32>
    %c0_35 = arith.constant 0 : index
    %c0_36 = arith.constant 0 : index
    %c0_37 = arith.constant 0 : index
    %75 = vector.load %arg4[%c0_35, %c0_36, %c0_37] : memref<1x1x13xf32, #tpu.memory_space<vmem>>, vector<1x1x13xf32>
    %76 = vector.shape_cast %75 : vector<1x1x13xf32> to vector<1x13xf32>
    %77 = vector.shape_cast %74 : vector<1x13xf32> to vector<1x1x13xf32>
    tpu.vector_store %arg4[%c0_35, %c0_36, %c0_37], %77 {strides = array<i32>} : memref<1x1x13xf32, #tpu.memory_space<vmem>>, vector<1x1x13xf32>,
    return
  }
  func.func @transform_0(%arg0: i32) -> (i32, i32, i32) {
    %c0_i32 = arith.constant 0 : i32
    %c0_i32_0 = arith.constant 0 : i32
    %c0_i32_1 = arith.constant 0 : i32
    return %arg0, %c0_i32, %c0_i32_0 : i32, i32, i32
  }
  func.func @transform_1(%arg0: i32) -> (i32, i32, i32) {
    %c0_i32 = arith.constant 0 : i32
    %c0_i32_0 = arith.constant 0 : i32
    %c0_i32_1 = arith.constant 0 : i32
    return %arg0, %c0_i32, %c0_i32_0 : i32, i32, i32
  }
  func.func @transform_2(%arg0: i32) -> (i32, i32, i32) {
    %c0_i32 = arith.constant 0 : i32
    %c0_i32_0 = arith.constant 0 : i32
    %c0_i32_1 = arith.constant 0 : i32
    return %arg0, %c0_i32, %c0_i32_0 : i32, i32, i32
  }
  func.func @transform_3(%arg0: i32) -> (i32, i32, i32) {
    %c0_i32 = arith.constant 0 : i32
    %c0_i32_0 = arith.constant 0 : i32
    %c0_i32_1 = arith.constant 0 : i32
    return %arg0, %c0_i32, %c0_i32_0 : i32, i32, i32
  }
}

</mosaic_0001>

<bundles_post_ra>
// kernel: loss_yolov1.1
= control target key start
LH: loop header
LB: loop body
LE: loop exit
PB: predicated region body
PF: predicated region fallthrough
CT: control target
= control target key end

     0   :  { %s559_s12 = smov 0   ;;  %s677_s0 = inlined_call_operand.vmem [shape: f32[2,8,256], index: 0, kind: input, shape index: {}]   ;;  %s678_s1 = inlined_call_operand.vmem [shape: f32[2,8,256], index: 1, kind: input, shape index: {}]   ;;  %s679_s2 = inlined_call_operand.vmem [shape: f32[2,1,256], index: 2, kind: input, shape index: {}]   ;;  %s680_s3 = inlined_call_operand.vmem [shape: f32[2,1,13], index: 3, kind: output, shape index: {}]  }
   0x1 LB: > { %s489_s13 = sadd.s32 4294967295, %s535_s12   ;;  %p493_p0 = scmp.ge.s32.totalorder %s535_s12, 1  ;;  %s535_s12 = sphi %s559_s12, %s13_s12  }
   0x2   : > { %p156_p1 = scmp.lt.s32.totalorder %s535_s12, 3 }
   0x4   : > { %p157_p2 = pnand %p493_p0, %p156_p1 }
   0x5   : > { %p187_p3 = scmp.lt.s32.totalorder (!%p157_p2), %s489_s13, 1  ;;  %v537_v0 = vmov (!%p157_p2), 1966171168   ;;  %v209_v2 = vlaneseq (!%p157_p2)  ;;  %v538_v13 = vmov (!%p157_p2), 0.0   ;;  %vm385_vm6 = vcmask (!%p157_p2), 1040384  }
   0x6   : > { %160 = sbr.rel (%p157_p2) target bundleno = 224 (0xe0), region = 32  ;;  %v309_v1 = vunpack.c.l.s4 (!%p157_p2), %v537_v0  ;;  %vm379_vm13 = vcmask (!%p157_p2), 1042432   ;;  %vm409_vm14 = vcmask (!%p157_p2), 130112   ;;  %vm412_vm15 = vcmask (!%p157_p2), 89088  }
   0x7   : > { %v587_v10 = vshrl.u32 (!%p157_p2), %v209_v2, 7  ;;  %vm599_vm2 = vcmp.lt.s32.totalorder (!%p157_p2), %v209_v2, 256 }
   0x8   : > { %v310_v6 = vunpack.c.0.s8 (!%p157_p2), %v309_v1 }
   0x9   : > { %v279_v27 = vsub.s32 (!%p157_p2), 0, %v587_v10  ;;  %v283_v29 = vsub.s32 (!%p157_p2), 1, %v587_v10  ;;  %vm214_vm4 = vcmp.ge.s32.totalorder (!%p157_p2), %v587_v10, 4  ;;  %vm211_vm7 = vcmp.ge.s32.totalorder (!%p157_p2), %v587_v10, 1 }
   0xa   : > { %v594_v17 = vsub.s32 (!%p157_p2), %v310_v6, %v587_v10  ;;  %vm212_vm8 = vcmp.lt.s32.totalorder (!%p157_p2), %v587_v10, 4  ;;  %vm215_vm11 = vcmp.lt.s32.totalorder (!%p157_p2), %v587_v10, 6 }
   0xb   : > { %vm649_vm12 = vmand (!%p157_p2), %vm211_vm7, %vm212_vm8 }
   0xd   : > { %s686_s13 = smov (!%p187_p3, %s489_s13), 1 }
   0xe   : > { %s505_s14 = sshll.u32 %s686_s13, 4  ;;  %s498_s21 = sshll.u32 %s686_s13, 1 }
   0xf   : > { %s191_s17 = scalar_lea.vmem %s677_s0, %s505_s14  ;;  %s196_s20 = scalar_lea.vmem %s678_s1, %s505_s14 }
  0x10   : > { %v576_v3 = vld [vmem:[%s191_s17] sm:$0xff]  ;;  %v578_v4 = vld [vmem:[%s191_s17 + $0x8] sm:$0xff]  ;;  %s200_s24 = scalar_lea.vmem %s679_s2, %s498_s21  ;;  %s203_s27 = scalar_lea.vmem %s680_s3, %s686_s13 }
  0x11   : > { %v216_v5 = vand.u32 2147483647, %v576_v3  ;;  %v581_v7 = vld [vmem:[%s196_s20] sm:$0xff]  ;;  %v217_v8 = vand.u32 2147483647, %v578_v4  ;;  %v584_v9 = vld [vmem:[%s196_s20 + $0x8] sm:$0xff] }
  0x12   : > { %vm262_vm0 = vcmp.gt.f32.partialorder %v581_v7, 0.0  ;;  %vm263_vm1 = vcmp.gt.f32.partialorder %v584_v9, 0.0  ;;  %v208_v28 = vld [vmem:[%s200_s24] sm:$0x3]  ;;  %vm230_vm3 = vcmp.ge.f32.partialorder %v576_v3, 0.0  ;;  %vm231_vm5 = vcmp.ge.f32.partialorder %v578_v4, 0.0 }
  0x13   : > { %v218_v11 = vsub.f32 0.0, %v216_v5  ;;  %v219_v12 = vsub.f32 0.0, %v217_v8  ;;  %v499_v14 = vsel %vm262_vm0, 1.0, %v538_v13  ;;  %v591_v16 = vsel %vm263_vm1, 1.0, %v538_v13 }
  0x14   : > { %v332_v19 = vcombine.low %v499_v14, %v591_v16  ;;  %v280_v30 = vrot.slane %v208_v28, %v279_v27  ;;  %v238_v31 = vmax.f32 %v576_v3, 0.0  ;;  %v239_v32 = vmax.f32 %v578_v4, 0.0 }
  0x15   : > { %v220_v15 = vmul.f32 1.442695, %v218_v11  ;;  %v222_v18 = vmul.f32 1.442695, %v219_v12  ;;  %vm268_vm9 = vcmp.eq.f32.partialorder %v581_v7, 0.0  ;;  %vm269_vm10 = vcmp.eq.f32.partialorder %v584_v9, 0.0 }
  0x16   : > { %v339_v20 = vrot.slane %v332_v19, %v594_v17  ;;  %v284_v35 = vrot.slane %v208_v28, %v283_v29  ;;  %v292_v36 = vrot.slane %v499_v14, %v279_v27  ;;  %v287_v40 = vsel %vm214_vm4, %v280_v30, 1.0 }
  0x17   : > { %517 = vpow2.f32 %v220_v15  ;;  %v248_v43 = vsub.f32 1.0, %v581_v7  ;;  %v249_v44 = vsub.f32 1.0, %v584_v9  ;;  %v501_v45 = vsel %vm268_vm9, 1.0, %v538_v13 }
  0x18   : > { %519 = vpow2.f32 %v222_v18  ;;  %v346_v22 = vrot.slane %v339_v20, %v594_v17  ;;  %v502_v49 = vsel %vm269_vm10, 1.0, %v538_v13  ;;  %v296_v50 = vrot.slane %v591_v16, %v279_v27 }
  0x19   : > { %v288_v53 = vsel %vm214_vm4, %v284_v35, 1.0  ;;  %v297_v54 = vmul.f32 %v292_v36, %v287_v40  ;;  %vm414_vm0 = vcmask 97280   ;;  %vm416_vm1 = vcmask 98304  }
  0x1a   : > { %349 = vst.msk [vmem:[#allocation2 + $0x11] ss:$8 sm:$0x3] %vm599_vm2, %v346_v22  ;;  %v298_v18 = vmul.f32 %v296_v50, %v288_v53 }
  0x21   : > { %v518_v23 = vpop.eup %517 }
  0x22   : > { %v520_v24 = vpop.eup %519  ;;  %v224_v25 = vadd.f32 1.0, %v518_v23  ;;  %v232_v34 = vsel %vm230_vm3, 1.0, %v518_v23 }
  0x23   : > { %v225_v26 = vadd.f32 1.0, %v520_v24  ;;  %v233_v39 = vsel %vm231_vm5, 1.0, %v520_v24 }
  0x24   : > { %521 = vlog2.f32 %v224_v25 }
  0x25   : > { %523 = vlog2.f32 %v225_v26 }
  0x26   : > { %525 = vrcp.f32 %v224_v25 }
  0x27   : > { %527 = vrcp.f32 %v225_v26 }
  0x2e   : > { %v522_v33 = vpop.eup %521 }
  0x2f   : > { %v524_v37 = vpop.eup %523  ;;  %v227_v38 = vmul.f32 0.6931472, %v522_v33 }
  0x30   : > { %v526_v41 = vpop.eup %525  ;;  %v229_v42 = vmul.f32 0.6931472, %v524_v37 }
  0x31   : > { %v528_v46 = vpop.eup %527  ;;  %v235_v47 = vmul.f32 %v526_v41, %v232_v34  ;;  %v240_v48 = vadd.f32 %v238_v31, %v227_v38 }
  0x32   : > { %v237_v51 = vmul.f32 %v528_v46, %v233_v39  ;;  %v241_v52 = vadd.f32 %v239_v32, %v229_v42  ;;  %v399_v39 = vand.u32 127, %v209_v2 }
  0x33   : > { %v242_v55 = vsub.f32 %v240_v48, %v576_v3  ;;  %v250_v56 = vmin.f32 %v240_v48, 100.0  ;;  %v256_v57 = vsel %vm215_vm11, %v235_v47, %v576_v3  ;;  %v386_v58 = vsel %vm385_vm6, %v235_v47, -inf }
  0x34   : > { %v243_v59 = vsub.f32 %v241_v52, %v578_v4  ;;  %v251_v60 = vmin.f32 %v241_v52, 100.0  ;;  %v257_v61 = vsel %vm215_vm11, %v237_v51, %v578_v4  ;;  %v258_v62 = vsub.f32 %v256_v57, %v581_v7 }
  0x35   : > { %v244_v63 = vmin.f32 %v242_v55, 100.0  ;;  %v252_v0 = vmul.f32 %v250_v56, %v248_v43  ;;  %v259_v1 = vsub.f32 %v257_v61, %v584_v9  ;;  %v387_v5 = vsel %vm385_vm6, %v237_v51, -inf }
  0x36   : > { %v245_v6 = vmin.f32 %v243_v59, 100.0  ;;  %v253_v8 = vmul.f32 %v251_v60, %v249_v44  ;;  %v260_v3 = vmul.f32 %v258_v62, %v258_v62  ;;  %v388_v11 = vmax.f32 %v386_v58, %v387_v5 }
  0x37   : > { %v246_v12 = vmul.f32 %v244_v63, %v581_v7  ;;  %v261_v13 = vmul.f32 %v259_v1, %v259_v1  ;;  %v353_v14 = vcombine.low %v235_v47, %v237_v51  ;;  %v391_v15 = vsel %vm385_vm6, %v235_v47, inf }
  0x38   : > { %v247_v16 = vmul.f32 %v245_v6, %v584_v9  ;;  %v303_v19 = vmul.f32 %v501_v45, %v260_v3  ;;  %389 = vmax.xlane.f32.xlu1 %v388_v11  ;;  %v392_v20 = vsel %vm385_vm6, %v237_v51, inf  ;;  %v404_v40 = vadd.s32 4294967288, %v399_v39 }
  0x39   : > { %v254_v7 = vadd.f32 %v252_v0, %v246_v12  ;;  %v304_v22 = vmul.f32 %v502_v49, %v261_v13  ;;  %v360_v23 = vrot.slane %v353_v14, %v594_v17  ;;  %v393_v24 = vmin.f32 %v391_v15, %v392_v20 }
  0x3a   : > { %v255_v25 = vadd.f32 %v253_v8, %v247_v16  ;;  %v402_v43 = vsub.s32 %v399_v39, %v587_v10 }
  0x3b   : > { %v274_v26 = vsel %vm649_vm12, %v254_v7, %v260_v3  ;;  %v307_v27 = vcombine.low %v303_v19, %v304_v22  ;;  %v367_v28 = vrot.slane %v360_v23, %v594_v17 }
  0x3c   : > { %v275_v9 = vsel %vm649_vm12, %v255_v25, %v261_v13  ;;  %v299_v29 = vmul.f32 %v297_v54, %v274_v26  ;;  %394 = vmin.xlane.f32.xlu1 %v393_v24 }
  0x3d   : > { %v300_v30 = vmul.f32 %v298_v18, %v275_v9  ;;  %v314_v31 = vrot.slane %v307_v27, %v594_v17  ;;  %370 = vst.msk [vmem:[#allocation2 + $0x12] ss:$8 sm:$0x3] %vm599_vm2, %v367_v28 }
  0x3f   : > { %v376_v32 = vadd.f32 %v300_v30, %v299_v29  ;;  %v321_v33 = vrot.slane %v314_v31, %v594_v17  ;;  %v407_v17 = vsub.s32 %v404_v40, %v587_v10 }
  0x41   : > { %377 = vadd.xlane.f32.xlu0 %v376_v32  ;;  %328 = vst.msk [vmem:[#allocation2 + $0x10] ss:$8 sm:$0x3] %vm599_vm2, %v321_v33 }
  0x48   : > { %v374_v34 = vld [vmem:[#allocation2 + $0x10] sm:$0x7]  ;;  %v375_v35 = vld [vmem:[#allocation2 + $0x18] sm:$0x7] }
  0x49   : > { %v380_v36 = vsel %vm379_vm13, %v374_v34, 0.0  ;;  %v381_v37 = vsel %vm379_vm13, %v375_v35, 0.0 }
  0x4a   : > { %v382_v38 = vadd.f32 %v381_v37, %v380_v36 }
  0x4c   : > { %383 = vadd.xlane.f32.xlu0 %v382_v38 }
  0xc5   : > { %v390_v42 = vpop.xlane.xlu1 %389 }
  0xc9   : > { %v395_v46 = vpop.xlane.xlu1 %394 }
  0xce   : > { %v378_v41 = vpop.xlane.xlu0 %377 }
  0xcf   : > { %v403_v44 = vrot.slane %v378_v41, %v402_v43 }
  0xd9   : > { %v384_v21 = vpop.xlane.xlu0 %383 }
  0xda   : > { %v408_v45 = vrot.slane %v384_v21, %v407_v17 }
  0xdc   : > { %v410_v47 = vsel %vm409_vm14, %v408_v45, %v403_v44 }
  0xdd   : > { %v413_v2 = vsel %vm412_vm15, %v410_v47, %v390_v42 }
  0xde   : > { %v415_v48 = vsel %vm414_vm0, %v413_v2, %v395_v46 }
  0xdf   : > { %417 = vst.msk [vmem:[%s203_s27] sm:$0x1] %vm416_vm1, %v415_v48 }
  0xe0 PF: > { %s13_s12 = sadd.s32 1, %s535_s12  }
  0xe1   : > { %p10_p4 = scmp.ge.s32.totalorder %s13_s12, 4  }
  0xe3   :  { %12 = sbr.rel (!%p10_p4) target bundleno = 1 (0x1), region = 71 }

</bundles_post_ra>
